<compile_context>
chip_gen: v5e
topology: v5e:2x2
jax: 0.10.0
libtpu: 0.0.40
codegen_flags: <defaults>
</compile_context>

<pallas_src>
import functools
import numpy as np
import jax
import jax.numpy as jnp
from jax.experimental import pallas as pl
from jax.experimental.pallas import tpu as pltpu

WINDOW_SIZE = 11
PAD = WINDOW_SIZE // 2
SIGMA = 1.5
C1 = 0.01 ** 2
C2 = 0.03 ** 2
_LANE = 128
_MAX_PACKED_PLANES_PER_BLOCK = 8      # bounds static kernel unrolling


def _gauss_1d(window_size=WINDOW_SIZE, sigma=SIGMA):
    # Same float32 Gaussian as the PyTorch module's _create_window.
    center = window_size // 2
    g = np.array([(x - center) ** 2 for x in range(window_size)], dtype=np.float32)
    g = np.exp(-g / np.float32(2.0 * sigma * sigma)).astype(np.float32)
    return (g / g.sum()).astype(np.float32)


def _band_matrix(n):
    """n x n banded (symmetric) matrix M: M @ x == zero-'same'-padded Gaussian blur of x."""
    g = _gauss_1d()
    m = np.zeros((n, n), dtype=np.float32)
    for i in range(n):
        for k in range(max(0, i - PAD), min(n, i + PAD + 1)):
            m[i, k] = g[k - i + PAD]
    return m


def _block_diag_band(w, groups):
    """Block-diagonal band matrix: blurs each of `groups` lane-packed planes independently."""
    return np.kron(np.eye(groups, dtype=np.float32), _band_matrix(w)).astype(np.float32)


def _ssim_kernel(a_h_ref, a_w_ref, x_ref, out_ref, *, planes, h):
    f32 = jnp.float32
    a_h = a_h_ref[...]                                   # (H, H)
    a_w = a_w_ref[...]                                   # (Wp, Wp), block-diagonal band
    wp = a_w.shape[0]

    x1 = x_ref[0].astype(f32).reshape(planes * h, wp)    # (Bp*H, Wp)
    x2 = x_ref[1].astype(f32).reshape(planes * h, wp)

    # W-pass blur of all 5 statistics for all packed planes: 5 MXU matmuls that
    # share the same RHS (no in-kernel concat / extra vector-store copies).
    t1 = jnp.dot(x1, a_w, preferred_element_type=f32)
    t2 = jnp.dot(x2, a_w, preferred_element_type=f32)
    t11 = jnp.dot(x1 * x1, a_w, preferred_element_type=f32)
    t22 = jnp.dot(x2 * x2, a_w, preferred_element_type=f32)
    t12 = jnp.dot(x1 * x2, a_w, preferred_element_type=f32)

    for p in range(planes):                              # static unroll, planes <= 8
        lo, hi = p * h, (p + 1) * h
        mu1 = jnp.dot(a_h, t1[lo:hi], preferred_element_type=f32)
        mu2 = jnp.dot(a_h, t2[lo:hi], preferred_element_type=f32)
        e11 = jnp.dot(a_h, t11[lo:hi], preferred_element_type=f32)
        e22 = jnp.dot(a_h, t22[lo:hi], preferred_element_type=f32)
        e12 = jnp.dot(a_h, t12[lo:hi], preferred_element_type=f32)

        mu1_sq = mu1 * mu1
        mu2_sq = mu2 * mu2
        mu1_mu2 = mu1 * mu2
        sigma1_sq = e11 - mu1_sq
        sigma2_sq = e22 - mu2_sq
        sigma12 = e12 - mu1_mu2

        num = (2.0 * mu1_mu2 + C1) * (2.0 * sigma12 + C2)
        den = (mu1_sq + mu2_sq + C1) * (sigma1_sq + sigma2_sq + C2)
        inv = pl.reciprocal(den, approx=True)            # EUP-side divide
        inv = inv * (2.0 - den * inv)                    # one Newton step -> ~f32 accuracy
        ssim_map = num * inv                             # (H, Wp)

        # Lane-dense per-column partial sums; per-original-plane sums are recovered
        # in the wrapper (this also lets padded planes be discarded exactly).
        out_ref[0, p, :] = jnp.sum(ssim_map, axis=0)


def ssim_pallas(img1, img2, size_average=True):
    N, C, H, W = img1.shape
    assert img2.shape == img1.shape
    P = N * C

    # ---- Lane packing along W for small planes.
    g = max(1, _LANE // W) if W < _LANE else 1
    Wp = g * W
    Pg = -(-P // g)                        # packed planes
    Pgg = Pg * g

    # ---- Generation-aware block sizing from actual VMEM capacity.
    try:
        vmem_cap = int(pltpu.get_tpu_info().vmem_capacity_bytes)
    except Exception:
        vmem_cap = 64 * 1024 * 1024        # conservative (v7x per-core) fallback
    usable = int(vmem_cap * 0.7)           # ~90 MiB on v5e/v6e, ~45 MiB on v7x
    const_bytes = 2 * 4 * (H * H + Wp * Wp)          # A_H / A_W incl. double buffers
    per_plane_bytes = 56 * H * Wp                    # dbl-buffered inputs + stats + epilogue
    b_fit = max(1, (usable - const_bytes) // per_plane_bytes)
    Bp = int(max(1, min(Pg, _MAX_PACKED_PLANES_PER_BLOCK, b_fit)))
    if Pg >= 2:                            # keep >=2 grid steps so both v7x cores get work
        Bp = min(Bp, -(-Pg // 2))
    num_blocks = -(-Pg // Bp)
    Pg_pad = num_blocks * Bp

    def pack(a):
        a = a.reshape(P, H, W)
        if Pgg != P:
            a = jnp.pad(a, ((0, Pgg - P), (0, 0), (0, 0)))
        a = a.reshape(Pg, g, H, W).transpose(0, 2, 1, 3).reshape(Pg, H, Wp)
        if Pg_pad != Pg:
            a = jnp.pad(a, ((0, Pg_pad - Pg), (0, 0), (0, 0)))
        return a

    x = jnp.stack([pack(img1), pack(img2)], axis=0)      # (2, Pg_pad, H, Wp)

    a_h = jnp.asarray(_band_matrix(H))
    a_w = jnp.asarray(_block_diag_band(W, g))

    kernel = functools.partial(_ssim_kernel, planes=Bp, h=H)
    # TODO(synk): for H or W >= ~512 switch A_H/A_W to a block-banded form (skip zero
    # K-tiles) and single-buffer the constant inputs to cut MXU flops and VMEM.
    col_sums = pl.pallas_call(
        kernel,
        out_shape=jax.ShapeDtypeStruct((num_blocks, Bp, Wp), jnp.float32),
        grid=(num_blocks,),
        in_specs=[
            pl.BlockSpec((H, H), lambda i: (0, 0)),
            pl.BlockSpec((Wp, Wp), lambda i: (0, 0)),
            pl.BlockSpec((2, Bp, H, Wp), lambda i: (0, i, 0, 0)),
        ],
        out_specs=pl.BlockSpec((1, Bp, Wp), lambda i: (i, 0, 0)),
        compiler_params=pltpu.CompilerParams(
            dimension_semantics=("parallel",),
            vmem_limit_bytes=int(vmem_cap * 0.9),
        ),
    )(a_h, a_w, x)

    # Per-original-plane SSIM-map sums (tiny glue; padded planes discarded exactly).
    plane_sums = col_sums.reshape(Pg_pad * g, W).sum(axis=-1)[:P]

    if size_average:
        return jnp.sum(plane_sums) / (P * H * W)                       # ssim_map.mean()
    else:
        return jnp.sum(plane_sums.reshape(N, C), axis=1) / (C * H * W)  # mean(1).mean(1).mean(1)


def _ssim_ref(img1, img2, size_average=True):
    # Plain-JAX reference (separable tap-sum blur), for a self-check only.
    g = jnp.asarray(_gauss_1d())
    N, C, H, W = img1.shape

    def blur(x):
        xp = jnp.pad(x, ((0, 0), (0, 0), (PAD, PAD), (0, 0)))
        xr = sum(g[k] * xp[:, :, k:k + H, :] for k in range(WINDOW_SIZE))
        xp2 = jnp.pad(xr, ((0, 0), (0, 0), (0, 0), (PAD, PAD)))
        return sum(g[k] * xp2[:, :, :, k:k + W] for k in range(WINDOW_SIZE))

    mu1, mu2 = blur(img1), blur(img2)
    mu1_sq, mu2_sq, mu1_mu2 = mu1 * mu1, mu2 * mu2, mu1 * mu2
    s1 = blur(img1 * img1) - mu1_sq
    s2 = blur(img2 * img2) - mu2_sq
    s12 = blur(img1 * img2) - mu1_mu2
    m = ((2 * mu1_mu2 + C1) * (2 * s12 + C2)) / ((mu1_sq + mu2_sq + C1) * (s1 + s2 + C2))
    return m.mean() if size_average else m.mean(axis=(1, 2, 3))


if __name__ == "__main__":
    key = jax.random.PRNGKey(0)
    k1, k2 = jax.random.split(key)
    N, C, H, W = 2, 4, 16, 16
    img1 = jax.random.uniform(k1, (N, C, H, W), dtype=jnp.float32)
    img2 = jax.random.uniform(k2, (N, C, H, W), dtype=jnp.float32)

    out = jax.block_until_ready(ssim_pallas(img1, img2, size_average=True))
    ref = jax.block_until_ready(_ssim_ref(img1, img2, size_average=True))
    assert out.shape == () and bool(jnp.isfinite(out))
    assert abs(float(out) - float(ref)) < 1e-4, (float(out), float(ref))

    out_na = jax.block_until_ready(ssim_pallas(img1, img2, size_average=False))
    ref_na = jax.block_until_ready(_ssim_ref(img1, img2, size_average=False))
    assert out_na.shape == (N,)
    assert float(jnp.max(jnp.abs(out_na - ref_na))) < 1e-4

    print("KERNEL_OK")
</pallas_src>

<mosaic_0001>
module attributes {stable_mosaic.version = 11 : i64} {
  func.func @_ssim_kernel(%arg0: i32, %arg1: memref<16x16xf32, #tpu.memory_space<vmem>>, %arg2: memref<128x128xf32, #tpu.memory_space<vmem>>, %arg3: memref<2x1x16x128xf32, #tpu.memory_space<vmem>>, %arg4: memref<1x1x128xf32, #tpu.memory_space<vmem>>) attributes {dimension_semantics = [#tpu.dimension_semantics<parallel>], iteration_bounds = array<i64: 1>, scalar_prefetch = 0 : i64, scratch_operands = 0 : i64, tpu.core_type = #tpu.core_type<tc>, window_params = [{pipeline_mode = #tpu.pipeline_mode<synchronous>, transform_indices = @transform_0, window_bounds = array<i64: 16, 16>}, {pipeline_mode = #tpu.pipeline_mode<synchronous>, transform_indices = @transform_1, window_bounds = array<i64: 128, 128>}, {transform_indices = @transform_2, window_bounds = array<i64: 2, 1, 16, 128>}, {transform_indices = @transform_3, window_bounds = array<i64: 1, 1, 128>}]} {
    %c0 = arith.constant 0 : index
    %c0_0 = arith.constant 0 : index
    %0 = vector.load %arg1[%c0, %c0_0] : memref<16x16xf32, #tpu.memory_space<vmem>>, vector<16x16xf32>
    %c0_1 = arith.constant 0 : index
    %c0_2 = arith.constant 0 : index
    %1 = vector.load %arg2[%c0_1, %c0_2] : memref<128x128xf32, #tpu.memory_space<vmem>>, vector<128x128xf32>
    %c0_3 = arith.constant 0 : index
    %c0_4 = arith.constant 0 : index
    %c0_5 = arith.constant 0 : index
    %c0_6 = arith.constant 0 : index
    %2 = vector.load %arg3[%c0_3, %c0_4, %c0_5, %c0_6] : memref<2x1x16x128xf32, #tpu.memory_space<vmem>>, vector<1x1x16x128xf32>
    %3 = vector.shape_cast %2 : vector<1x1x16x128xf32> to vector<1x16x128xf32>
    %4 = vector.shape_cast %3 : vector<1x16x128xf32> to vector<16x128xf32>
    %c1 = arith.constant 1 : index
    %c0_7 = arith.constant 0 : index
    %c0_8 = arith.constant 0 : index
    %c0_9 = arith.constant 0 : index
    %5 = vector.load %arg3[%c1, %c0_7, %c0_8, %c0_9] : memref<2x1x16x128xf32, #tpu.memory_space<vmem>>, vector<1x1x16x128xf32>
    %6 = vector.shape_cast %5 : vector<1x1x16x128xf32> to vector<1x16x128xf32>
    %7 = vector.shape_cast %6 : vector<1x16x128xf32> to vector<16x128xf32>
    %cst = arith.constant dense<0.000000e+00> : vector<16x128xf32>
    %8 = tpu.matmul %4, %1, %cst {dimension_numbers = #tpu.dot_dimension_numbers<[1], [0], [0], [1], [0, 0, 1, 1], [], []>} : vector<16x128xf32>, vector<128x128xf32>, vector<16x128xf32> -> vector<16x128xf32>
    %cst_10 = arith.constant dense<0.000000e+00> : vector<16x128xf32>
    %9 = tpu.matmul %7, %1, %cst_10 {dimension_numbers = #tpu.dot_dimension_numbers<[1], [0], [0], [1], [0, 0, 1, 1], [], []>} : vector<16x128xf32>, vector<128x128xf32>, vector<16x128xf32> -> vector<16x128xf32>
    %10 = arith.mulf %4, %4 : vector<16x128xf32>
    %cst_11 = arith.constant dense<0.000000e+00> : vector<16x128xf32>
    %11 = tpu.matmul %10, %1, %cst_11 {dimension_numbers = #tpu.dot_dimension_numbers<[1], [0], [0], [1], [0, 0, 1, 1], [], []>} : vector<16x128xf32>, vector<128x128xf32>, vector<16x128xf32> -> vector<16x128xf32>
    %12 = arith.mulf %7, %7 : vector<16x128xf32>
    %cst_12 = arith.constant dense<0.000000e+00> : vector<16x128xf32>
    %13 = tpu.matmul %12, %1, %cst_12 {dimension_numbers = #tpu.dot_dimension_numbers<[1], [0], [0], [1], [0, 0, 1, 1], [], []>} : vector<16x128xf32>, vector<128x128xf32>, vector<16x128xf32> -> vector<16x128xf32>
    %14 = arith.mulf %4, %7 : vector<16x128xf32>
    %cst_13 = arith.constant dense<0.000000e+00> : vector<16x128xf32>
    %15 = tpu.matmul %14, %1, %cst_13 {dimension_numbers = #tpu.dot_dimension_numbers<[1], [0], [0], [1], [0, 0, 1, 1], [], []>} : vector<16x128xf32>, vector<128x128xf32>, vector<16x128xf32> -> vector<16x128xf32>
    %cst_14 = arith.constant dense<0.000000e+00> : vector<16x128xf32>
    %16 = tpu.matmul %0, %8, %cst_14 {dimension_numbers = #tpu.dot_dimension_numbers<[1], [0], [0], [1], [0, 0, 1, 1], [], []>} : vector<16x16xf32>, vector<16x128xf32>, vector<16x128xf32> -> vector<16x128xf32>
    %cst_15 = arith.constant dense<0.000000e+00> : vector<16x128xf32>
    %17 = tpu.matmul %0, %9, %cst_15 {dimension_numbers = #tpu.dot_dimension_numbers<[1], [0], [0], [1], [0, 0, 1, 1], [], []>} : vector<16x16xf32>, vector<16x128xf32>, vector<16x128xf32> -> vector<16x128xf32>
    %cst_16 = arith.constant dense<0.000000e+00> : vector<16x128xf32>
    %18 = tpu.matmul %0, %11, %cst_16 {dimension_numbers = #tpu.dot_dimension_numbers<[1], [0], [0], [1], [0, 0, 1, 1], [], []>} : vector<16x16xf32>, vector<16x128xf32>, vector<16x128xf32> -> vector<16x128xf32>
    %cst_17 = arith.constant dense<0.000000e+00> : vector<16x128xf32>
    %19 = tpu.matmul %0, %13, %cst_17 {dimension_numbers = #tpu.dot_dimension_numbers<[1], [0], [0], [1], [0, 0, 1, 1], [], []>} : vector<16x16xf32>, vector<16x128xf32>, vector<16x128xf32> -> vector<16x128xf32>
    %cst_18 = arith.constant dense<0.000000e+00> : vector<16x128xf32>
    %20 = tpu.matmul %0, %15, %cst_18 {dimension_numbers = #tpu.dot_dimension_numbers<[1], [0], [0], [1], [0, 0, 1, 1], [], []>} : vector<16x16xf32>, vector<16x128xf32>, vector<16x128xf32> -> vector<16x128xf32>
    %21 = arith.mulf %16, %16 : vector<16x128xf32>
    %22 = arith.mulf %17, %17 : vector<16x128xf32>
    %23 = arith.mulf %16, %17 : vector<16x128xf32>
    %24 = arith.subf %18, %21 : vector<16x128xf32>
    %25 = arith.subf %19, %22 : vector<16x128xf32>
    %26 = arith.subf %20, %23 : vector<16x128xf32>
    %cst_19 = arith.constant 2.000000e+00 : f32
    %27 = vector.broadcast %cst_19 : f32 to vector<16x128xf32>
    %28 = arith.mulf %27, %23 : vector<16x128xf32>
    %cst_20 = arith.constant 9.99999974E-5 : f32
    %29 = vector.broadcast %cst_20 : f32 to vector<16x128xf32>
    %30 = arith.addf %28, %29 : vector<16x128xf32>
    %cst_21 = arith.constant 2.000000e+00 : f32
    %31 = vector.broadcast %cst_21 : f32 to vector<16x128xf32>
    %32 = arith.mulf %31, %26 : vector<16x128xf32>
    %cst_22 = arith.constant 8.99999984E-4 : f32
    %33 = vector.broadcast %cst_22 : f32 to vector<16x128xf32>
    %34 = arith.addf %32, %33 : vector<16x128xf32>
    %35 = arith.mulf %30, %34 : vector<16x128xf32>
    %36 = arith.addf %21, %22 : vector<16x128xf32>
    %cst_23 = arith.constant 9.99999974E-5 : f32
    %37 = vector.broadcast %cst_23 : f32 to vector<16x128xf32>
    %38 = arith.addf %36, %37 : vector<16x128xf32>
    %39 = arith.addf %24, %25 : vector<16x128xf32>
    %cst_24 = arith.constant 8.99999984E-4 : f32
    %40 = vector.broadcast %cst_24 : f32 to vector<16x128xf32>
    %41 = arith.addf %39, %40 : vector<16x128xf32>
    %42 = arith.mulf %38, %41 : vector<16x128xf32>
    %43 = tpu.reciprocal %42 {approx = true} : vector<16x128xf32> -> vector<16x128xf32>
    %44 = arith.mulf %42, %43 : vector<16x128xf32>
    %cst_25 = arith.constant 2.000000e+00 : f32
    %45 = vector.broadcast %cst_25 : f32 to vector<16x128xf32>
    %46 = arith.subf %45, %44 : vector<16x128xf32>
    %47 = arith.mulf %43, %46 : vector<16x128xf32>
    %48 = arith.mulf %35, %47 : vector<16x128xf32>
    %cst_26 = arith.constant dense<0.000000e+00> : vector<128xf32>
    %49 = vector.multi_reduction <add>, %48, %cst_26 [0] : vector<16x128xf32> to vector<128xf32>
    %c0_27 = arith.constant 0 : index
    %c0_28 = arith.constant 0 : index
    %c0_29 = arith.constant 0 : index
    %50 = vector.load %arg4[%c0_27, %c0_28, %c0_29] : memref<1x1x128xf32, #tpu.memory_space<vmem>>, vector<1x1x128xf32>
    %51 = vector.shape_cast %50 : vector<1x1x128xf32> to vector<128xf32>
    %52 = vector.shape_cast %49 : vector<128xf32> to vector<1x1x128xf32>
    tpu.vector_store %arg4[%c0_27, %c0_28, %c0_29], %52 {strides = array<i32>} : memref<1x1x128xf32, #tpu.memory_space<vmem>>, vector<1x1x128xf32>,
    return
  }
  func.func @transform_0(%arg0: i32) -> (i32, i32) {
    %c0_i32 = arith.constant 0 : i32
    %c0_i32_0 = arith.constant 0 : i32
    %c0_i32_1 = arith.constant 0 : i32
    return %c0_i32, %c0_i32_0 : i32, i32
  }
  func.func @transform_1(%arg0: i32) -> (i32, i32) {
    %c0_i32 = arith.constant 0 : i32
    %c0_i32_0 = arith.constant 0 : i32
    %c0_i32_1 = arith.constant 0 : i32
    return %c0_i32, %c0_i32_0 : i32, i32
  }
  func.func @transform_2(%arg0: i32) -> (i32, i32, i32, i32) {
    %c0_i32 = arith.constant 0 : i32
    %c0_i32_0 = arith.constant 0 : i32
    %c0_i32_1 = arith.constant 0 : i32
    %c0_i32_2 = arith.constant 0 : i32
    return %c0_i32, %arg0, %c0_i32_0, %c0_i32_1 : i32, i32, i32, i32
  }
  func.func @transform_3(%arg0: i32) -> (i32, i32, i32) {
    %c0_i32 = arith.constant 0 : i32
    %c0_i32_0 = arith.constant 0 : i32
    %c0_i32_1 = arith.constant 0 : i32
    return %arg0, %c0_i32, %c0_i32_0 : i32, i32, i32
  }
}

</mosaic_0001>

<bundles_post_ra>
// kernel: tpu_custom_call.1
= control target key start
LH: loop header
LB: loop body
LE: loop exit
PB: predicated region body
PF: predicated region fallthrough
CT: control target
= control target key end

     0   :  { %8 = vsyncpa [#allocation3], 0  ;;  %s636_s0 = inlined_call_operand.hbm [shape: f32[16,16], index: 0, kind: input, shape index: {}]   ;;  %s637_s1 = inlined_call_operand.hbm [shape: f32[128,128], index: 1, kind: input, shape index: {}]   ;;  %s638_s2 = inlined_call_operand.hbm [shape: f32[2,1,16,128], index: 2, kind: input, shape index: {}]   ;;  %s639_s3 = inlined_call_operand.hbm [shape: f32[1,1,128], index: 3, kind: output, shape index: {}]  }
   0x1   :  { %9 = vsyncpa [#allocation6], 0 }
   0x2   :  { %10 = vsyncpa [#allocation4], 0  ;;  %s28_s14 = sshll.u32 %s637_s1, 4  ;;  %s518_s15 = smov [#allocation5]   ;;  %s29_s14 = int_to_ptr.hbm [resolvable:$true] %s28_s14 }
   0x3   :  { %s30_s16 = sshll.u32 %s518_s15, 4  ;;  %s15_s19 = sshll.u32 %s636_s0, 4  ;;  %s31_s16 = int_to_ptr.vmem [resolvable:$true] %s30_s16  ;;  %s16_s19 = int_to_ptr.hbm [resolvable:$true] %s15_s19 }
   0x4   :  { %s519_s20 = smov 128   ;;  %s520_s21 = smov 8  }
   0x5   :  { %36 = dma.hbm_to_vmem [thread:$0]  %s29_s14, 2048, %s31_s16, [#allocation6], %s519_s20, %s519_s20, %s520_s21  }
   0x6   :  { %s521_s22 = smov [#allocation2]   ;;  %s41_s26 = sshll.u32 %s638_s2, 4  ;;  %s42_s26 = int_to_ptr.hbm [resolvable:$true] %s41_s26 }
   0x7   :  { %s17_s23 = sshll.u32 %s521_s22, 4  ;;  %s522_s1 = smov [#allocation7]   ;;  %s18_s23 = int_to_ptr.vmem [resolvable:$true] %s17_s23 }
   0x8   :  { %23 = dma.hbm_to_vmem [thread:$0]  %s16_s19, 256, %s18_s23, [#allocation3], %s519_s20, %s519_s20, %s520_s21  }
   0x9   :  { %s43_s27 = sshll.u32 %s522_s1, 4  ;;  %s44_s27 = int_to_ptr.vmem [resolvable:$true] %s43_s27 }
   0xa   :  { %49 = dma.hbm_to_vmem [thread:$0]  %s42_s26, 512, %s44_s27, [#allocation6], %s519_s20, %s519_s20, %s520_s21  }
   0xb   :  { %512 = dma.done.wait [#allocation3], 256  }
   0xc   :  { %513 = vsyncadd [#allocation3], 4294967040 }
   0xd   :  { %514 = dma.done.wait [#allocation6], 2560  }
   0xe   :  { %515 = vsyncadd [#allocation6], 4294964736  ;;  %v553_v0 = vld [vmem:[#allocation5 + $0x78] sm:$0xff]  ;;  %v555_v1 = vld [vmem:[#allocation5 + $0x70] sm:$0xff]  ;;  %vm206_vm0 = vcmask 130048   ;;  %s523_s0 = smov [#allocation8]  }
   0xf   :  { %85 = vmatpush.msra.mxu0 %v553_v0  ;;  %133 = vmatpush.msra.mxu2 %v553_v0  ;;  %v559_v2 = vld [vmem:[#allocation5 + $0x68] sm:$0xff]  ;;  %v565_v3 = vld [vmem:[#allocation5 + $0x60] sm:$0xff]  ;;  %v571_v4 = vld [vmem:[#allocation5 + $0x58] sm:$0xff]  ;;  %s383_s2 = sshll.u32 %s523_s0, 4  ;;  %s385_s30 = sshll.u32 %s639_s3, 4  ;;  %s384_s2 = int_to_ptr.vmem [resolvable:$true] %s383_s2  ;;  %s386_s30 = int_to_ptr.hbm [resolvable:$true] %s385_s30 }
  0x10   :  { %108 = vmatpush.msra.mxu1 %v553_v0  ;;  %158 = vmatpush.msra.mxu3 %v553_v0  ;;  %v577_v5 = vld [vmem:[#allocation5 + $0x50] sm:$0xff]  ;;  %v583_v6 = vld [vmem:[#allocation5 + $0x48] sm:$0xff]  ;;  %v589_v7 = vld [vmem:[#allocation5 + $0x40] sm:$0xff] }
  0x11   :  { %86 = vmatpush.msra.mxu0 %v555_v1  ;;  %134 = vmatpush.msra.mxu2 %v555_v1  ;;  %v595_v8 = vld [vmem:[#allocation5 + $0x38] sm:$0xff]  ;;  %v601_v9 = vld [vmem:[#allocation5 + $0x30] sm:$0xff]  ;;  %v69_v10 = vld [vmem:[#allocation5 + $0x28] sm:$0xff] }
  0x12   :  { %109 = vmatpush.msra.mxu1 %v555_v1  ;;  %159 = vmatpush.msra.mxu3 %v555_v1  ;;  %v68_v11 = vld [vmem:[#allocation5 + $0x20] sm:$0xff]  ;;  %v67_v12 = vld [vmem:[#allocation5 + $0x18] sm:$0xff]  ;;  %v66_v13 = vld [vmem:[#allocation5 + $0x10] sm:$0xff] }
  0x13   :  { %87 = vmatpush.msra.mxu0 %v559_v2  ;;  %135 = vmatpush.msra.mxu2 %v559_v2  ;;  %v80_v14 = vld [vmem:[#allocation7] sm:$0xff]  ;;  %v65_v15 = vld [vmem:[#allocation5 + $0x8] sm:$0xff]  ;;  %v83_v18 = vld [vmem:[#allocation7 + $0x10] sm:$0xff] }
  0x14   :  { %110 = vmatpush.msra.mxu1 %v559_v2  ;;  %160 = vmatpush.msra.mxu3 %v559_v2  ;;  %v64_v16 = vld [vmem:[#allocation5] sm:$0xff]  ;;  %v131_v17 = vmul.f32 %v80_v14, %v80_v14  ;;  %v156_v19 = vmul.f32 %v83_v18, %v83_v18  ;;  %v81_v20 = vld [vmem:[#allocation7 + $0x8] sm:$0xff]  ;;  %v84_v22 = vld [vmem:[#allocation7 + $0x18] sm:$0xff]  ;;  %v181_v24 = vmul.f32 %v83_v18, %v80_v14 }
  0x15   :  { %88 = vmatpush.msra.mxu0 %v565_v3  ;;  %136 = vmatpush.msra.mxu2 %v565_v3  ;;  %v132_v21 = vmul.f32 %v81_v20, %v81_v20  ;;  %v157_v23 = vmul.f32 %v84_v22, %v84_v22  ;;  %v182_v25 = vmul.f32 %v84_v22, %v81_v20  ;;  %v62_v30 = vld [vmem:[#allocation2] sm:$0xff]  ;;  %v63_v34 = vld [vmem:[#allocation2 + $0x8] sm:$0xff] }
  0x16   :  { %111 = vmatpush.msra.mxu1 %v565_v3  ;;  %161 = vmatpush.msra.mxu3 %v565_v3 }
  0x17   :  { %89 = vmatpush.msra.mxu0 %v571_v4  ;;  %137 = vmatpush.msra.mxu2 %v571_v4 }
  0x18   :  { %112 = vmatpush.msra.mxu1 %v571_v4  ;;  %162 = vmatpush.msra.mxu3 %v571_v4 }
  0x19   :  { %90 = vmatpush.msra.mxu0 %v577_v5  ;;  %138 = vmatpush.msra.mxu2 %v577_v5 }
  0x1a   :  { %113 = vmatpush.msra.mxu1 %v577_v5  ;;  %163 = vmatpush.msra.mxu3 %v577_v5 }
  0x1b   :  { %91 = vmatpush.msra.mxu0 %v583_v6  ;;  %139 = vmatpush.msra.mxu2 %v583_v6 }
  0x1c   :  { %114 = vmatpush.msra.mxu1 %v583_v6  ;;  %164 = vmatpush.msra.mxu3 %v583_v6 }
  0x1d   :  { %92 = vmatpush.msra.mxu0 %v589_v7  ;;  %140 = vmatpush.msra.mxu2 %v589_v7 }
  0x1e   :  { %115 = vmatpush.msra.mxu1 %v589_v7  ;;  %165 = vmatpush.msra.mxu3 %v589_v7 }
  0x1f   :  { %93 = vmatpush.msra.mxu0 %v595_v8  ;;  %141 = vmatpush.msra.mxu2 %v595_v8 }
  0x20   :  { %116 = vmatpush.msra.mxu1 %v595_v8  ;;  %166 = vmatpush.msra.mxu3 %v595_v8 }
  0x21   :  { %94 = vmatpush.msra.mxu0 %v601_v9  ;;  %142 = vmatpush.msra.mxu2 %v601_v9 }
  0x22   :  { %117 = vmatpush.msra.mxu1 %v601_v9  ;;  %167 = vmatpush.msra.mxu3 %v601_v9 }
  0x23   :  { %95 = vmatpush.msra.mxu0 %v69_v10  ;;  %143 = vmatpush.msra.mxu2 %v69_v10 }
  0x24   :  { %118 = vmatpush.msra.mxu1 %v69_v10  ;;  %168 = vmatpush.msra.mxu3 %v69_v10 }
  0x25   :  { %96 = vmatpush.msra.mxu0 %v68_v11  ;;  %144 = vmatpush.msra.mxu2 %v68_v11 }
  0x26   :  { %119 = vmatpush.msra.mxu1 %v68_v11  ;;  %169 = vmatpush.msra.mxu3 %v68_v11 }
  0x27   :  { %97 = vmatpush.msra.mxu0 %v67_v12  ;;  %145 = vmatpush.msra.mxu2 %v67_v12 }
  0x28   :  { %120 = vmatpush.msra.mxu1 %v67_v12  ;;  %170 = vmatpush.msra.mxu3 %v67_v12 }
  0x29   :  { %98 = vmatpush.msra.mxu0 %v66_v13  ;;  %146 = vmatpush.msra.mxu2 %v66_v13 }
  0x2a   :  { %121 = vmatpush.msra.mxu1 %v66_v13  ;;  %171 = vmatpush.msra.mxu3 %v66_v13 }
  0x2b   :  { %99 = vmatpush.msra.mxu0 %v65_v15  ;;  %147 = vmatpush.msra.mxu2 %v65_v15 }
  0x2c   :  { %122 = vmatpush.msra.mxu1 %v65_v15  ;;  %172 = vmatpush.msra.mxu3 %v65_v15 }
  0x2d   :  { %100 = vmatpush.msra.mxu0 %v64_v16  ;;  %148 = vmatpush.msra.mxu2 %v64_v16 }
  0x2e   :  { %101 = vmatmul.f32.vlgmr.msra.gmra.mxu0 %v80_v14  ;;  %149 = vmatmul.f32.vlgmr.msra.gmra.mxu2 %v131_v17 }
  0x2f   :  { %183 = vmatpush.msrb.mxu0 %v553_v0  ;;  %123 = vmatpush.msra.mxu1 %v64_v16 }
  0x30   :  { %124 = vmatmul.f32.vlgmr.msra.gmra.mxu1 %v83_v18  ;;  %173 = vmatpush.msra.mxu3 %v64_v16 }
  0x31   :  { %184 = vmatpush.msrb.mxu0 %v555_v1  ;;  %174 = vmatmul.f32.vlgmr.msra.gmra.mxu3 %v156_v19 }
  0x33   :  { %185 = vmatpush.msrb.mxu0 %v559_v2 }
  0x35   :  { %186 = vmatpush.msrb.mxu0 %v565_v3 }
  0x36   :  { %104 = vmatmul.f32.gmra.mxu0 %v81_v20  ;;  %152 = vmatmul.f32.gmra.mxu2 %v132_v21 }
  0x37   :  { %187 = vmatpush.msrb.mxu0 %v571_v4 }
  0x38   :  { %127 = vmatmul.f32.gmra.mxu1 %v84_v22 }
  0x39   :  { %188 = vmatpush.msrb.mxu0 %v577_v5  ;;  %177 = vmatmul.f32.gmra.mxu3 %v157_v23 }
  0x3b   :  { %189 = vmatpush.msrb.mxu0 %v583_v6 }
  0x3d   :  { %190 = vmatpush.msrb.mxu0 %v589_v7 }
  0x3f   :  { %191 = vmatpush.msrb.mxu0 %v595_v8 }
  0x41   :  { %192 = vmatpush.msrb.mxu0 %v601_v9 }
  0x43   :  { %193 = vmatpush.msrb.mxu0 %v69_v10 }
  0x45   :  { %194 = vmatpush.msrb.mxu0 %v68_v11 }
  0x47   :  { %195 = vmatpush.msrb.mxu0 %v67_v12 }
  0x49   :  { %196 = vmatpush.msrb.mxu0 %v66_v13 }
  0x4b   :  { %197 = vmatpush.msrb.mxu0 %v65_v15 }
  0x4d   :  { %198 = vmatpush.msrb.mxu0 %v64_v16 }
  0x4e   :  { %199 = vmatmul.f32.vlgmr.msrb.gmra.mxu0 %v181_v24 }
  0x56   :  { %202 = vmatmul.f32.gmra.mxu0 %v182_v25 }
  0xab   :  { %v102_v26 = vpop.f32.mrf.mxu0 }
  0xad   :  { %v125_v27 = vpop.f32.mrf.mxu1 }
  0xb1   :  { %v150_v28 = vpop.f32.mrf.mxu2 }
  0xb3   :  { %v105_v29 = vpop.f32.mrf.mxu0 }
  0xb4   :  { %227 = vmatpush.msrb.mxu1 %v105_v29  ;;  %v175_v31 = vpop.f32.mrf.mxu3 }
  0xb5   :  { %v128_v32 = vpop.f32.mrf.mxu1 }
  0xb6   :  { %228 = vmatpush.msrb.mxu1 %v102_v26  ;;  %250 = vmatpush.msrb.mxu2 %v128_v32 }
  0xb7   :  { %396 = vmatmul.msk.f32.vlgmr.msrb.gmra.mxu1 %vm206_vm0, %v62_v30 }
  0xb8   :  { %251 = vmatpush.msrb.mxu2 %v125_v27 }
  0xb9   :  { %v153_v33 = vpop.f32.mrf.mxu2  ;;  %398 = vmatmul.msk.f32.vlgmr.msrb.gmra.mxu2 %vm206_vm0, %v62_v30 }
  0xba   :  { %273 = vmatpush.msrb.mxu3 %v153_v33 }
  0xbc   :  { %274 = vmatpush.msrb.mxu3 %v150_v28  ;;  %v178_v35 = vpop.f32.mrf.mxu3 }
  0xbd   :  { %400 = vmatmul.msk.f32.vlgmr.msrb.gmra.mxu3 %vm206_vm0, %v62_v30  ;;  %296 = vmatpush.msra.mxu1 %v178_v35 }
  0xbf   :  { %397 = vmatmul.msk.f32.gmra.mxu1 %vm206_vm0, %v63_v34 }
  0xc0   :  { %297 = vmatpush.msra.mxu1 %v175_v31 }
  0xc1   :  { %399 = vmatmul.msk.f32.gmra.mxu2 %vm206_vm0, %v63_v34 }
  0xc5   :  { %401 = vmatmul.msk.f32.gmra.mxu3 %vm206_vm0, %v63_v34 }
  0xc7   :  { %402 = vmatmul.msk.f32.vlgmr.msra.gmra.mxu1 %vm206_vm0, %v62_v30 }
  0xcb   :  { %v200_v36 = vpop.f32.mrf.mxu0 }
  0xcf   :  { %403 = vmatmul.msk.f32.gmra.mxu1 %vm206_vm0, %v63_v34 }
  0xd3   :  { %v203_v37 = vpop.f32.mrf.mxu0 }
  0xd4   :  { %319 = vmatpush.msra.mxu2 %v203_v37 }
  0xd6   :  { %320 = vmatpush.msra.mxu2 %v200_v36 }
  0xd7   :  { %404 = vmatmul.msk.f32.vlgmr.msra.gmra.mxu2 %vm206_vm0, %v62_v30 }
  0xdf   :  { %405 = vmatmul.msk.f32.gmra.mxu2 %vm206_vm0, %v63_v34 }
 0x134   :  { %v230_v38 = vpop.f32.mrf.mxu1 }
 0x135   :  { %v328_v44 = vmul.f32 %v230_v38, %v230_v38 }
 0x13c   :  { %v233_v39 = vpop.f32.mrf.mxu1  ;;  %v253_v40 = vpop.f32.mrf.mxu2 }
 0x13d   :  { %v330_v43 = vmul.f32 %v253_v40, %v253_v40  ;;  %v329_v48 = vmul.f32 %v233_v39, %v233_v39  ;;  %v332_v0 = vmul.f32 %v253_v40, %v230_v38 }
 0x13f   :  { %v350_v53 = vadd.f32 %v330_v43, %v328_v44  ;;  %v340_v7 = vmul.f32 2.0, %v332_v0 }
 0x140   :  { %v276_v41 = vpop.f32.mrf.mxu3 }
 0x141   :  { %v334_v47 = vsub.f32 %v276_v41, %v328_v44  ;;  %v352_v59 = vadd.f32 0.0001, %v350_v53  ;;  %v342_v14 = vadd.f32 0.0001, %v340_v7 }
 0x144   :  { %v299_v42 = vpop.f32.mrf.mxu1  ;;  %v256_v46 = vpop.f32.mrf.mxu2 }
 0x145   :  { %v336_v45 = vsub.f32 %v299_v42, %v330_v43  ;;  %v331_v49 = vmul.f32 %v256_v46, %v256_v46  ;;  %v333_v5 = vmul.f32 %v256_v46, %v233_v39 }
 0x147   :  { %v354_v51 = vadd.f32 %v336_v45, %v334_v47  ;;  %v351_v56 = vadd.f32 %v331_v49, %v329_v48  ;;  %v341_v11 = vmul.f32 2.0, %v333_v5 }
 0x148   :  { %v279_v50 = vpop.f32.mrf.mxu3 }
 0x149   :  { %v335_v54 = vsub.f32 %v279_v50, %v329_v48  ;;  %v356_v57 = vadd.f32 0.0009, %v354_v51  ;;  %v353_v61 = vadd.f32 0.0001, %v351_v56  ;;  %v343_v18 = vadd.f32 0.0001, %v341_v11 }
 0x14b   :  { %v358_v62 = vmul.f32 %v356_v57, %v352_v59 }
 0x14c   :  { %v302_v52 = vpop.f32.mrf.mxu1 }
 0x14d   :  { %v337_v55 = vsub.f32 %v302_v52, %v331_v49  ;;  %412 = vrcp.f32 %v358_v62 }
 0x14f   :  { %v355_v58 = vadd.f32 %v337_v55, %v335_v54 }
 0x151   :  { %v357_v60 = vadd.f32 0.0009, %v355_v58 }
 0x153   :  { %v359_v63 = vmul.f32 %v357_v60, %v353_v61  ;;  %v413_v3 = vpop.eup %412 }
 0x154   :  { %v362_v8 = vmul.f32 %v413_v3, %v358_v62 }
 0x155   :  { %414 = vrcp.f32 %v359_v63 }
 0x156   :  { %v364_v15 = vsub.f32 2.0, %v362_v8 }
 0x158   :  { %v366_v21 = vmul.f32 %v413_v3, %v364_v15 }
 0x15a   :  { %v322_v1 = vpop.f32.mrf.mxu2 }
 0x15b   :  { %v338_v2 = vsub.f32 %v322_v1, %v332_v0  ;;  %v415_v4 = vpop.eup %414 }
 0x15c   :  { %v363_v9 = vmul.f32 %v415_v4, %v359_v63 }
 0x15d   :  { %v344_v6 = vmul.f32 2.0, %v338_v2 }
 0x15e   :  { %v365_v16 = vsub.f32 2.0, %v363_v9 }
 0x15f   :  { %v346_v12 = vadd.f32 0.0009, %v344_v6 }
 0x160   :  { %v367_v23 = vmul.f32 %v415_v4, %v365_v16 }
 0x161   :  { %v348_v19 = vmul.f32 %v346_v12, %v342_v14 }
 0x162   :  { %v325_v10 = vpop.f32.mrf.mxu2 }
 0x163   :  { %v339_v13 = vsub.f32 %v325_v10, %v333_v5  ;;  %v368_v24 = vmul.f32 %v366_v21, %v348_v19 }
 0x165   :  { %v345_v17 = vmul.f32 2.0, %v339_v13 }
 0x167   :  { %v347_v20 = vadd.f32 0.0009, %v345_v17 }
 0x169   :  { %v349_v22 = vmul.f32 %v347_v20, %v343_v18 }
 0x16b   :  { %v369_v25 = vmul.f32 %v367_v23, %v349_v22 }
 0x16d   :  { %v370_v26 = vadd.f32 %v369_v25, %v368_v24 }
 0x16f   :  { %v371_v27 = vrot.slane %v370_v26, 4 }
 0x171   :  { %v372_v28 = vadd.f32 %v371_v27, %v370_v26 }
 0x173   :  { %v373_v29 = vrot.slane %v372_v28, 2 }
 0x175   :  { %v374_v30 = vadd.f32 %v373_v29, %v372_v28 }
 0x177   :  { %v375_v31 = vrot.slane %v374_v30, 1 }
 0x179   :  { %v376_v32 = vadd.f32 %v375_v31, %v374_v30 }
 0x17b   :  { %377 = vst [vmem:[#allocation8] sm:$0x1] %v376_v32 }
 0x17c   :  { %388 = dma.vmem_to_hbm [thread:$0]  %s384_s2, 16, %s386_s30, [#allocation4]  }
 0x17d   :  { %516 = dma.done.wait [#allocation4], 16  }
 0x17e   :  { %517 = vsyncadd [#allocation4], 4294967280 }
 0x17f   :  { %393 = vsyncpa [#allocation3], 1 }
 0x180   :  { %394 = vsyncpa [#allocation6], 1 }
 0x181   :  { %395 = vsyncpa [#allocation4], 1 }

</bundles_post_ra>
